<compile_context>
chip_gen: v7x
topology: tpu7x:2x2x1
jax: 0.10.0
libtpu: 0.0.40
codegen_flags: <defaults>
</compile_context>

<pallas_src>
import functools

import jax
import jax.numpy as jnp
from jax import lax
from jax.experimental import pallas as pl
from jax.experimental.pallas import tpu as pltpu


def _conv_fused_gemm_kernel(x_ref, w_ref, b_ref, o_ref, *, W, KH, KW, pad, HW_pad):
    """B_blk images per grid step, one fused MXU dot per image.

    x_ref: (B_blk, C, pad + HW_pad + pad)  spatially-flattened, zero-padded images
    w_ref: (OC, KH*KW*C)                   fused weight matrix (tap-major, then C)
    b_ref: (OC, 1)                         bias (f32)
    o_ref: (B_blk, OC, HW_pad)             lane-dense output (HW_pad % 128 == 0)
    """
    B_blk, C, _ = x_ref.shape

    # Column index of every flattened output position (hoisted out of tap loop).
    col = lax.broadcasted_iota(jnp.int32, (1, HW_pad), 1) % W
    # Only KW-1 distinct row-wrap masks (one per nonzero horizontal offset).
    masks = {}
    for sw in range(-(KW // 2), KW // 2 + 1):
        if sw != 0:
            masks[sw] = (col + sw >= 0) & (col + sw < W)

    for b in range(B_blk):
        taps = []
        for t in range(KH * KW):
            sh = t // KW - KH // 2            # vertical tap offset
            sw = t % KW - KW // 2             # horizontal tap offset
            start = pad + sh * W + sw         # static, always >= 0
            xs = x_ref[b, :, pl.ds(start, HW_pad)]          # (C, HW_pad)
            if sw != 0:                                      # mask row-wrap cols
                xs = jnp.where(masks[sw], xs, jnp.zeros((), xs.dtype))
            taps.append(xs)
        # Stack the KH*KW windows along sublanes -> single contraction dim.
        stacked = jnp.concatenate(taps, axis=0)              # (KH*KW*C, HW_pad)
        # One fused MXU dot: (OC, KH*KW*C) @ (KH*KW*C, HW_pad), f32 accumulation.
        acc = jnp.dot(w_ref[...], stacked, preferred_element_type=jnp.float32)
        o_ref[b] = (acc + b_ref[...]).astype(o_ref.dtype)


def _pick_batch_block(B, bytes_per_image):
    """Largest batch block that (a) fits a conservative VMEM budget, (b) keeps
    the grid >= 2 steps when B >= 2 (v7x has 2 TensorCores), (c) divides B."""
    budget = 8 * 1024 * 1024                      # fits v5e's 16 MiB scoped default
    max_blk = max(1, budget // max(bytes_per_image, 1))
    target = max(1, (B + 1) // 2)                 # grid >= 2 when B >= 2
    b_blk = max(1, min(max_blk, target, B))
    while B % b_blk:
        b_blk -= 1
    return b_blk


def conv2d_same_pallas(x_nchw, weight_oihw, bias, *, compute_dtype=None,
                       out_dtype=None):
    """Stride-1, SAME-padded Conv2d (odd kernel) as a fused Pallas implicit GEMM.

    Accepts/returns NCHW (PyTorch convention). `compute_dtype=jnp.bfloat16`
    halves input HBM/DMA traffic on v6e/v7x (accumulation stays f32);
    `out_dtype=jnp.bfloat16` additionally halves output write traffic.
    """
    B, C, H, W = x_nchw.shape
    OC, IC, KH, KW = weight_oihw.shape
    assert IC == C and KH % 2 == 1 and KW % 2 == 1, "odd kernel, matching C_in"
    HW = H * W
    HW_pad = ((HW + 127) // 128) * 128            # lane-dense output width
    pad = (KH // 2) * W + (KW // 2)               # max |flattened tap shift|
    if out_dtype is None:
        out_dtype = x_nchw.dtype

    # Flatten spatially (free reshape, no transpose) and zero-pad the flat axis
    # so every shifted window of width HW_pad stays in bounds; out-of-image rows
    # land in the zero padding, row-wrap columns are masked in-kernel.
    L_in = pad + HW_pad + pad
    x_flat = jnp.pad(x_nchw.reshape(B, C, HW),
                     ((0, 0), (0, 0), (pad, L_in - pad - HW)))

    # (OC, C, KH, KW) -> (OC, KH*KW*C): fused weight matrix; row ordering matches
    # the in-kernel tap-major stacking (tap t = kh*KW + kw, then channel c).
    w_mat = jnp.transpose(weight_oihw, (0, 2, 3, 1)).reshape(OC, KH * KW * C)
    b_col = bias.reshape(OC, 1).astype(jnp.float32)

    if compute_dtype is not None:                 # e.g. bf16 inputs on v6e/v7x
        x_flat = x_flat.astype(compute_dtype)
        w_mat = w_mat.astype(compute_dtype)

    itemsize = jnp.dtype(x_flat.dtype).itemsize
    out_itemsize = jnp.dtype(out_dtype).itemsize
    # Double-buffered per-image VMEM footprint (input block + output block).
    bytes_per_image = 2 * (C * L_in * itemsize + OC * HW_pad * out_itemsize)
    B_blk = _pick_batch_block(B, bytes_per_image)
    n_steps = B // B_blk

    kernel = functools.partial(
        _conv_fused_gemm_kernel, W=W, KH=KH, KW=KW, pad=pad, HW_pad=HW_pad)

    cost = pl.CostEstimate(
        flops=2 * B * OC * H * W * C * KH * KW,
        transcendentals=0,
        bytes_accessed=(x_flat.size * itemsize
                        + w_mat.size * itemsize
                        + b_col.size * 4
                        + B * OC * HW_pad * out_itemsize),
    )

    out_flat = pl.pallas_call(
        kernel,
        out_shape=jax.ShapeDtypeStruct((B, OC, HW_pad), out_dtype),
        grid_spec=pltpu.PrefetchScalarGridSpec(
            num_scalar_prefetch=0,
            grid=(n_steps,),
            in_specs=[
                pl.BlockSpec((B_blk, C, L_in), lambda i: (i, 0, 0)),
                pl.BlockSpec((OC, KH * KW * C), lambda i: (0, 0)),
                pl.BlockSpec((OC, 1), lambda i: (0, 0)),
            ],
            out_specs=pl.BlockSpec((B_blk, OC, HW_pad), lambda i: (i, 0, 0)),
        ),
        compiler_params=pltpu.CompilerParams(
            dimension_semantics=("parallel",),
            vmem_limit_bytes=32 * 1024 * 1024,
        ),
        cost_estimate=cost,
    )(x_flat, w_mat, b_col)

    # Strip lane padding (no-op when HW % 128 == 0) and restore NCHW.
    return out_flat[:, :, :HW].reshape(B, OC, H, W)


class FeatureExtractor:
    """JAX/Pallas equivalent of the PyTorch FeatureExtractor wrapper:
    forward(x) = self.layer(x)."""

    def __init__(self, layer):
        self.layer = layer

    def __call__(self, x):
        return self.layer(x)


if __name__ == "__main__":
    key = jax.random.PRNGKey(0)
    k_x, k_w, k_b = jax.random.split(key, 3)

    B, C, H, W = 2, 4, 16, 16
    OC, KH, KW = 8, 3, 3

    x = jax.random.normal(k_x, (B, C, H, W), dtype=jnp.float32)
    # Deterministic synthetic Conv2d parameters (PyTorch OIHW convention).
    weight = jax.random.normal(k_w, (OC, C, KH, KW), dtype=jnp.float32) * 0.1
    bias = jax.random.normal(k_b, (OC,), dtype=jnp.float32) * 0.1

    # Reference: XLA's native convolution (matches PyTorch Conv2d semantics).
    ref = lax.conv_general_dilated(
        x, weight, window_strides=(1, 1), padding="SAME",
        dimension_numbers=("NCHW", "OIHW", "NCHW"),
    ) + bias.reshape(1, OC, 1, 1)

    # f32 path (tight correctness check) — preferred on v5e.
    layer_f32 = jax.jit(lambda inp: conv2d_same_pallas(inp, weight, bias))
    extractor = FeatureExtractor(layer_f32)
    out = jax.block_until_ready(extractor(x))
    assert out.shape == (B, OC, H, W)
    assert jnp.allclose(out, ref, atol=1e-4, rtol=1e-4)

    # bf16 MXU path (recommended on v6e/v7x): bf16 inputs AND bf16 output halve
    # HBM read/write traffic; accumulation, bias add stay f32 in-kernel.
    layer_bf16 = jax.jit(
        lambda inp: conv2d_same_pallas(inp, weight, bias,
                                       compute_dtype=jnp.bfloat16,
                                       out_dtype=jnp.bfloat16))
    out_bf16 = jax.block_until_ready(FeatureExtractor(layer_bf16)(x))
    assert out_bf16.shape == (B, OC, H, W)
    assert jnp.allclose(out_bf16.astype(jnp.float32), ref, atol=5e-2, rtol=5e-2)

    print("KERNEL_OK")
</pallas_src>

<mosaic_0001>
module attributes {stable_mosaic.version = 11 : i64} {
  func.func @_conv_fused_gemm_kernel(%arg0: i32, %arg1: memref<1x4x290xf32, #tpu.memory_space<vmem>>, %arg2: memref<8x36xf32, #tpu.memory_space<vmem>>, %arg3: memref<8x1xf32, #tpu.memory_space<vmem>>, %arg4: memref<1x8x256xf32, #tpu.memory_space<vmem>>) attributes {dimension_semantics = [#tpu.dimension_semantics<parallel>], iteration_bounds = array<i64: 2>, scalar_prefetch = 0 : i64, scratch_operands = 0 : i64, tpu.core_type = #tpu.core_type<tc>, window_params = [{transform_indices = @transform_0, window_bounds = array<i64: 1, 4, 290>}, {pipeline_mode = #tpu.pipeline_mode<synchronous>, transform_indices = @transform_1, window_bounds = array<i64: 8, 36>}, {pipeline_mode = #tpu.pipeline_mode<synchronous>, transform_indices = @transform_2, window_bounds = array<i64: 8, 1>}, {transform_indices = @transform_3, window_bounds = array<i64: 1, 8, 256>}]} {
    %0 = tpu.iota {dimensions = array<i32: 1>} : vector<1x256xi32>
    %c16_i32 = arith.constant 16 : i32
    %c0_i32 = arith.constant 0 : i32
    %1 = arith.cmpi eq, %c16_i32, %c0_i32 : i32
    %c1_i32 = arith.constant 1 : i32
    %2 = arith.select %1, %c1_i32, %c16_i32 : i32
    %3 = vector.broadcast %2 : i32 to vector<1x256xi32>
    %4 = arith.remsi %0, %3 : vector<1x256xi32>
    %c0_i32_0 = arith.constant 0 : i32
    %5 = vector.broadcast %c0_i32_0 : i32 to vector<1x256xi32>
    %6 = arith.cmpi ne, %4, %5 : vector<1x256xi32>
    %c0_i32_1 = arith.constant 0 : i32
    %7 = vector.broadcast %c0_i32_1 : i32 to vector<1x256xi32>
    %8 = arith.cmpi slt, %4, %7 : vector<1x256xi32>
    %c0_i32_2 = arith.constant 0 : i32
    %9 = arith.cmpi slt, %2, %c0_i32_2 : i32
    %10 = vector.broadcast %9 : i1 to vector<1x256xi1>
    %11 = vector.broadcast %10 : vector<1x256xi1> to vector<1x256xi1>
    %12 = arith.xori %8, %11 : vector<1x256xi1>
    %13 = arith.andi %12, %6 : vector<1x256xi1>
    %14 = vector.broadcast %2 : i32 to vector<1x256xi32>
    %15 = arith.addi %4, %14 : vector<1x256xi32>
    %16 = arith.select %13, %15, %4 : vector<1x256xi1>, vector<1x256xi32>
    %c-1_i32 = arith.constant -1 : i32
    %17 = vector.broadcast %c-1_i32 : i32 to vector<1x256xi32>
    %18 = arith.addi %16, %17 : vector<1x256xi32>
    %c0_i32_3 = arith.constant 0 : i32
    %19 = vector.broadcast %c0_i32_3 : i32 to vector<1x256xi32>
    %20 = arith.cmpi sge, %18, %19 : vector<1x256xi32>
    %c-1_i32_4 = arith.constant -1 : i32
    %21 = vector.broadcast %c-1_i32_4 : i32 to vector<1x256xi32>
    %22 = arith.addi %16, %21 : vector<1x256xi32>
    %c16_i32_5 = arith.constant 16 : i32
    %23 = vector.broadcast %c16_i32_5 : i32 to vector<1x256xi32>
    %24 = arith.cmpi slt, %22, %23 : vector<1x256xi32>
    %25 = arith.andi %20, %24 : vector<1x256xi1>
    %c1_i32_6 = arith.constant 1 : i32
    %26 = vector.broadcast %c1_i32_6 : i32 to vector<1x256xi32>
    %27 = arith.addi %16, %26 : vector<1x256xi32>
    %c0_i32_7 = arith.constant 0 : i32
    %28 = vector.broadcast %c0_i32_7 : i32 to vector<1x256xi32>
    %29 = arith.cmpi sge, %27, %28 : vector<1x256xi32>
    %c1_i32_8 = arith.constant 1 : i32
    %30 = vector.broadcast %c1_i32_8 : i32 to vector<1x256xi32>
    %31 = arith.addi %16, %30 : vector<1x256xi32>
    %c16_i32_9 = arith.constant 16 : i32
    %32 = vector.broadcast %c16_i32_9 : i32 to vector<1x256xi32>
    %33 = arith.cmpi slt, %31, %32 : vector<1x256xi32>
    %34 = arith.andi %29, %33 : vector<1x256xi1>
    %c0 = arith.constant 0 : index
    %c0_10 = arith.constant 0 : index
    %c0_11 = arith.constant 0 : index
    %35 = vector.load %arg1[%c0, %c0_10, %c0_11] : memref<1x4x290xf32, #tpu.memory_space<vmem>>, vector<1x4x256xf32>
    %36 = vector.shape_cast %35 : vector<1x4x256xf32> to vector<4x256xf32>
    %cst = arith.constant 0.000000e+00 : f32
    %37 = vector.shape_cast %25 : vector<1x256xi1> to vector<1x256xi1>
    %38 = vector.broadcast %37 : vector<1x256xi1> to vector<4x256xi1>
    %39 = vector.broadcast %cst : f32 to vector<4x256xf32>
    %40 = arith.select %38, %36, %39 : vector<4x256xi1>, vector<4x256xf32>
    %c0_12 = arith.constant 0 : index
    %c0_13 = arith.constant 0 : index
    %c1 = arith.constant 1 : index
    %41 = vector.load %arg1[%c0_12, %c0_13, %c1] : memref<1x4x290xf32, #tpu.memory_space<vmem>>, vector<1x4x256xf32>
    %42 = vector.shape_cast %41 : vector<1x4x256xf32> to vector<4x256xf32>
    %c0_14 = arith.constant 0 : index
    %c0_15 = arith.constant 0 : index
    %c2 = arith.constant 2 : index
    %43 = vector.load %arg1[%c0_14, %c0_15, %c2] : memref<1x4x290xf32, #tpu.memory_space<vmem>>, vector<1x4x256xf32>
    %44 = vector.shape_cast %43 : vector<1x4x256xf32> to vector<4x256xf32>
    %cst_16 = arith.constant 0.000000e+00 : f32
    %45 = vector.shape_cast %34 : vector<1x256xi1> to vector<1x256xi1>
    %46 = vector.broadcast %45 : vector<1x256xi1> to vector<4x256xi1>
    %47 = vector.broadcast %cst_16 : f32 to vector<4x256xf32>
    %48 = arith.select %46, %44, %47 : vector<4x256xi1>, vector<4x256xf32>
    %c0_17 = arith.constant 0 : index
    %c0_18 = arith.constant 0 : index
    %c16 = arith.constant 16 : index
    %49 = vector.load %arg1[%c0_17, %c0_18, %c16] : memref<1x4x290xf32, #tpu.memory_space<vmem>>, vector<1x4x256xf32>
    %50 = vector.shape_cast %49 : vector<1x4x256xf32> to vector<4x256xf32>
    %cst_19 = arith.constant 0.000000e+00 : f32
    %51 = vector.shape_cast %25 : vector<1x256xi1> to vector<1x256xi1>
    %52 = vector.broadcast %51 : vector<1x256xi1> to vector<4x256xi1>
    %53 = vector.broadcast %cst_19 : f32 to vector<4x256xf32>
    %54 = arith.select %52, %50, %53 : vector<4x256xi1>, vector<4x256xf32>
    %c0_20 = arith.constant 0 : index
    %c0_21 = arith.constant 0 : index
    %c17 = arith.constant 17 : index
    %55 = vector.load %arg1[%c0_20, %c0_21, %c17] : memref<1x4x290xf32, #tpu.memory_space<vmem>>, vector<1x4x256xf32>
    %56 = vector.shape_cast %55 : vector<1x4x256xf32> to vector<4x256xf32>
    %c0_22 = arith.constant 0 : index
    %c0_23 = arith.constant 0 : index
    %c18 = arith.constant 18 : index
    %57 = vector.load %arg1[%c0_22, %c0_23, %c18] : memref<1x4x290xf32, #tpu.memory_space<vmem>>, vector<1x4x256xf32>
    %58 = vector.shape_cast %57 : vector<1x4x256xf32> to vector<4x256xf32>
    %cst_24 = arith.constant 0.000000e+00 : f32
    %59 = vector.shape_cast %34 : vector<1x256xi1> to vector<1x256xi1>
    %60 = vector.broadcast %59 : vector<1x256xi1> to vector<4x256xi1>
    %61 = vector.broadcast %cst_24 : f32 to vector<4x256xf32>
    %62 = arith.select %60, %58, %61 : vector<4x256xi1>, vector<4x256xf32>
    %c0_25 = arith.constant 0 : index
    %c0_26 = arith.constant 0 : index
    %c32 = arith.constant 32 : index
    %63 = vector.load %arg1[%c0_25, %c0_26, %c32] : memref<1x4x290xf32, #tpu.memory_space<vmem>>, vector<1x4x256xf32>
    %64 = vector.shape_cast %63 : vector<1x4x256xf32> to vector<4x256xf32>
    %cst_27 = arith.constant 0.000000e+00 : f32
    %65 = vector.shape_cast %25 : vector<1x256xi1> to vector<1x256xi1>
    %66 = vector.broadcast %65 : vector<1x256xi1> to vector<4x256xi1>
    %67 = vector.broadcast %cst_27 : f32 to vector<4x256xf32>
    %68 = arith.select %66, %64, %67 : vector<4x256xi1>, vector<4x256xf32>
    %c0_28 = arith.constant 0 : index
    %c0_29 = arith.constant 0 : index
    %c33 = arith.constant 33 : index
    %69 = vector.load %arg1[%c0_28, %c0_29, %c33] : memref<1x4x290xf32, #tpu.memory_space<vmem>>, vector<1x4x256xf32>
    %70 = vector.shape_cast %69 : vector<1x4x256xf32> to vector<4x256xf32>
    %c0_30 = arith.constant 0 : index
    %c0_31 = arith.constant 0 : index
    %c34 = arith.constant 34 : index
    %71 = vector.load %arg1[%c0_30, %c0_31, %c34] : memref<1x4x290xf32, #tpu.memory_space<vmem>>, vector<1x4x256xf32>
    %72 = vector.shape_cast %71 : vector<1x4x256xf32> to vector<4x256xf32>
    %cst_32 = arith.constant 0.000000e+00 : f32
    %73 = vector.shape_cast %34 : vector<1x256xi1> to vector<1x256xi1>
    %74 = vector.broadcast %73 : vector<1x256xi1> to vector<4x256xi1>
    %75 = vector.broadcast %cst_32 : f32 to vector<4x256xf32>
    %76 = arith.select %74, %72, %75 : vector<4x256xi1>, vector<4x256xf32>
    %77 = tpu.concatenate %40, %42, %48, %54, %56, %62, %68, %70, %76 in 0 : vector<4x256xf32>, vector<4x256xf32>, vector<4x256xf32>, vector<4x256xf32>, vector<4x256xf32>, vector<4x256xf32>, vector<4x256xf32>, vector<4x256xf32>, vector<4x256xf32> -> vector<36x256xf32>
    %c0_33 = arith.constant 0 : index
    %c0_34 = arith.constant 0 : index
    %78 = vector.load %arg2[%c0_33, %c0_34] : memref<8x36xf32, #tpu.memory_space<vmem>>, vector<8x36xf32>
    %cst_35 = arith.constant dense<0.000000e+00> : vector<8x256xf32>
    %79 = tpu.matmul %78, %77, %cst_35 {dimension_numbers = #tpu.dot_dimension_numbers<[1], [0], [0], [1], [0, 0, 1, 1], [], []>} : vector<8x36xf32>, vector<36x256xf32>, vector<8x256xf32> -> vector<8x256xf32>
    %c0_36 = arith.constant 0 : index
    %c0_37 = arith.constant 0 : index
    %80 = vector.load %arg3[%c0_36, %c0_37] : memref<8x1xf32, #tpu.memory_space<vmem>>, vector<8x1xf32>
    %81 = vector.broadcast %80 : vector<8x1xf32> to vector<8x256xf32>
    %82 = arith.addf %79, %81 : vector<8x256xf32>
    %c0_38 = arith.constant 0 : index
    %c0_39 = arith.constant 0 : index
    %c0_40 = arith.constant 0 : index
    %83 = vector.load %arg4[%c0_38, %c0_39, %c0_40] : memref<1x8x256xf32, #tpu.memory_space<vmem>>, vector<1x8x256xf32>
    %84 = vector.shape_cast %83 : vector<1x8x256xf32> to vector<8x256xf32>
    %85 = vector.shape_cast %82 : vector<8x256xf32> to vector<1x8x256xf32>
    tpu.vector_store %arg4[%c0_38, %c0_39, %c0_40], %85 {strides = array<i32>} : memref<1x8x256xf32, #tpu.memory_space<vmem>>, vector<1x8x256xf32>,
    return
  }
  func.func @transform_0(%arg0: i32) -> (i32, i32, i32) {
    %c0_i32 = arith.constant 0 : i32
    %c0_i32_0 = arith.constant 0 : i32
    %c0_i32_1 = arith.constant 0 : i32
    return %arg0, %c0_i32, %c0_i32_0 : i32, i32, i32
  }
  func.func @transform_1(%arg0: i32) -> (i32, i32) {
    %c0_i32 = arith.constant 0 : i32
    %c0_i32_0 = arith.constant 0 : i32
    %c0_i32_1 = arith.constant 0 : i32
    return %c0_i32, %c0_i32_0 : i32, i32
  }
  func.func @transform_2(%arg0: i32) -> (i32, i32) {
    %c0_i32 = arith.constant 0 : i32
    %c0_i32_0 = arith.constant 0 : i32
    %c0_i32_1 = arith.constant 0 : i32
    return %c0_i32, %c0_i32_0 : i32, i32
  }
  func.func @transform_3(%arg0: i32) -> (i32, i32, i32) {
    %c0_i32 = arith.constant 0 : i32
    %c0_i32_0 = arith.constant 0 : i32
    %c0_i32_1 = arith.constant 0 : i32
    return %arg0, %c0_i32, %c0_i32_0 : i32, i32, i32
  }
}

</mosaic_0001>

<bundles_post_ra>
// kernel: _lambda_.1
= control target key start
LH: loop header
LB: loop body
LE: loop exit
PB: predicated region body
PF: predicated region fallthrough
CT: control target
= control target key end

     0   :  { %s615_s12 = smov 0   ;;  %s717_s0 = inlined_call_operand.vmem [shape: f32[2,4,290], index: 0, kind: input, shape index: {}]   ;;  %s718_s1 = inlined_call_operand.vmem [shape: f32[8,36], index: 1, kind: input, shape index: {}]   ;;  %s719_s2 = inlined_call_operand.vmem [shape: f32[8,1], index: 2, kind: input, shape index: {}]   ;;  %s720_s3 = inlined_call_operand.vmem [shape: f32[2,8,256], index: 3, kind: output, shape index: {}]  }
   0x1 LB: > { %s496_s13 = sadd.s32 4294967295, %s583_s12   ;;  %p500_p0 = scmp.ge.s32.totalorder %s583_s12, 1  ;;  %s583_s12 = sphi %s615_s12, %s13_s12  }
   0x2   : > { %p137_p1 = scmp.lt.s32.totalorder %s583_s12, 3 }
   0x4   : > { %p138_p2 = pnand %p500_p0, %p137_p1 }
   0x5   : > { %p161_p3 = scmp.lt.s32.totalorder (!%p138_p2), %s496_s13, 1  ;;  %s585_s18 = smov (!%p138_p2), 126   ;;  %v592_v7 = vmov (!%p138_p2), 0.0   ;;  %v593_v8 = vmov (!%p138_p2), 0   ;;  %v352_v9 = vld [vmem:[%s719_s2] sm:$0xff] (!%p138_p2)  ;;  %v171_v10 = vlaneseq (!%p138_p2)  ;;  %vm249_vm0 = vcmask (!%p138_p2), 916480  }
   0x6   : > { %141 = sbr.rel (%p138_p2) target bundleno = 384 (0x180), region = 32  ;;  %s586_s19 = smov (!%p138_p2), 112   ;;  %432 = vmatprep.mubr.f32.mxu0 (!%p138_p2), %v592_v7  ;;  %572 = vset.pattern.permute.xlu1 (!%p138_p2), %v593_v8  ;;  %vm236_vm4 = vcmask (!%p138_p2), 1031168   ;;  %vm303_vm5 = vcmask (!%p138_p2), 1039360   ;;  %vm342_vm6 = vcmask (!%p138_p2), 1043456   ;;  %vm262_vm8 = vcmask (!%p138_p2), 900096  }
   0x7   : > { %s587_s20 = smov (!%p138_p2), 110   ;;  %s588_s21 = smov (!%p138_p2), 127   ;;  %573 = vset.pattern.permute.xlu0 (!%p138_p2), %v593_v8  ;;  %v172_v11 = vand.u32 (!%p138_p2), 127, %v171_v10  ;;  %vm275_vm9 = vcmask (!%p138_p2), 785408   ;;  %vm337_vm10 = vcmask (!%p138_p2), 777216   ;;  %vm320_vm11 = vcmask (!%p138_p2), 908288  }
   0x8   : > { %s589_s22 = smov (!%p138_p2), 96   ;;  %s590_s23 = smov (!%p138_p2), 95   ;;  %vm288_vm12 = vcmask (!%p138_p2), 769024   ;;  %vm358_vm13 = vcmask (!%p138_p2), 293888  }
   0x9   : > { %s591_s24 = smov (!%p138_p2), 111   ;;  %s594_s25 = smov (!%p138_p2), 94   ;;  %v173_v12 = vadd.s32 (!%p138_p2), 128, %v172_v11  ;;  %v178_v13 = vand.u32 (!%p138_p2), 15, %v172_v11 }
   0xb   : > { %v185_v14 = vand.u32 (!%p138_p2), 15, %v173_v12  ;;  %v651_v18 = vadd.s32 (!%p138_p2), 4294967295, %v178_v13  ;;  %v657_v26 = vadd.s32 (!%p138_p2), 1, %v178_v13 }
   0xd   : > { %s722_s13 = smov (!%p161_p3, %s496_s13), 1  ;;  %v649_v17 = vadd.s32 4294967295, %v185_v14  ;;  %v653_v19 = vadd.s32 1, %v185_v14  ;;  %vm200_vm2 = vcmp.ge.s32.totalorder %v651_v18, 0  ;;  %vm210_vm7 = vcmp.lt.s32.totalorder %v657_v26, 16 }
   0xe   : > { %s518_s14 = smul.u32 12, %s722_s13  ;;  %s509_s30 = sshll.u32 %s722_s13, 4 }
   0xf   : > { %vm201_vm1 = vcmp.ge.s32.totalorder %v649_v17, 0  ;;  %vm211_vm3 = vcmp.lt.s32.totalorder %v653_v19, 16  ;;  %s170_s6 = scalar_lea.vmem %s720_s3, %s509_s30 }
  0x10   : > { %s165_s17 = scalar_lea.vmem %s717_s0, %s518_s14 }
  0x11   : > { %v629_v0 = vld [vmem:[%s165_s17] sm:$0xff]  ;;  %v224_v1 = vld [vmem:[%s165_s17 + $0x8] sm:$0xf] }
  0x12   : > { %230 = vrot.lane.b32.xlu1 %v629_v0, %s585_s18  ;;  %243 = vrot.lane.b32.xlu0 %v629_v0, %s586_s19  ;;  %v635_v2 = vcombine.high %v629_v0, %v629_v0  ;;  %v296_v3 = vcombine.low %v224_v1, %v224_v1  ;;  %v295_v6 = vcombine.low %v629_v0, %v629_v0  ;;  %v222_v42 = vsel %vm200_vm2, %v629_v0, 0.0 }
  0x14   : > { %v542_v4 = vpack.i.bf16 %v224_v1, %v635_v2  ;;  %v547_v5 = vpack.i.bf16 %v296_v3, %v629_v0  ;;  %v223_v36 = vsel %vm201_vm1, %v635_v2, 0.0 }
  0x16   : > { %543 = vrot.lane.b32.xlu1 %v542_v4, %s585_s18  ;;  %538 = vrot.lane.b32.xlu0 %v542_v4, %s586_s19 }
  0x1a   : > { %553 = vrot.lane.b32.xlu1 %v542_v4, %s587_s20  ;;  %548 = vrot.lane.b32.xlu0 %v547_v5, %s588_s21 }
  0x1e   : > { %256 = vrot.lane.b32.xlu1 %v629_v0, %s587_s20  ;;  %297 = vrot.lane.b32.xlu0 %v295_v6, %s588_s21 }
  0x22   : > { %269 = vrot.lane.b32.xlu1 %v629_v0, %s589_s22  ;;  %558 = vrot.lane.b32.xlu0 %v542_v4, %s589_s22 }
  0x26   : > { %568 = vrot.lane.b32.xlu1 %v547_v5, %s590_s23  ;;  %563 = vrot.lane.b32.xlu0 %v542_v4, %s591_s24 }
  0x2a   : > { %331 = vrot.lane.b32.xlu1 %v295_v6, %s590_s23  ;;  %314 = vrot.lane.b32.xlu0 %v629_v0, %s591_s24 }
  0x2e   : > { %286 = vrot.lane.b32.xlu1 %v224_v1, %s594_s25  ;;  %284 = vrot.lane.b32.xlu0 %v635_v2, %s594_s25 }
  0x32   : > { %282 = vrot.lane.b32.xlu0 %v629_v0, %s594_s25  ;;  %355 = vperm.xlu1 %572, %v352_v9  }
  0x84   : > { %v231_v15 = vpop.permute.xlu1 %230  ;;  %v244_v16 = vpop.permute.xlu0 %243 }
  0x88   : > { %v544_v20 = vpop.permute.xlu1 %543  ;;  %v539_v21 = vpop.permute.xlu0 %538 }
  0x89   : > { %v546_v22 = vunpack.i.h.bf16 %v544_v20  ;;  %v545_v23 = vunpack.i.l.bf16 %v544_v20  ;;  %v541_v24 = vunpack.i.h.bf16 %v539_v21  ;;  %v540_v25 = vunpack.i.l.bf16 %v539_v21 }
  0x8b   : > { %v250_v27 = vsel %vm249_vm0, %v244_v16, %v540_v25  ;;  %v251_v28 = vsel %vm249_vm0, %v540_v25, %v541_v24  ;;  %v238_v29 = vsel %vm236_vm4, %v545_v23, %v546_v22  ;;  %v237_v39 = vsel %vm236_vm4, %v231_v15, %v545_v23 }
  0x8c   : > { %v554_v30 = vpop.permute.xlu1 %553  ;;  %v549_v31 = vpop.permute.xlu0 %548  ;;  %v255_v32 = vsel %vm201_vm1, %v251_v28, 0.0  ;;  %v254_v33 = vsel %vm200_vm2, %v250_v27, 0.0  ;;  %v242_v37 = vsel %vm211_vm3, %v238_v29, 0.0  ;;  %v241_v51 = vsel %vm210_vm7, %v237_v39, 0.0 }
  0x8d   : > { %v551_v34 = vunpack.i.h.bf16 %v549_v31  ;;  %v550_v35 = vunpack.i.l.bf16 %v549_v31  ;;  %v311_v38 = vrot.slane %v255_v32, 4  ;;  %v310_v40 = vrot.slane %v254_v33, 4  ;;  %v351_v31 = vld [vmem:[%s718_s1] sm:$0xff] }
  0x8e   : > { %v556_v43 = vunpack.i.h.bf16 %v554_v30  ;;  %v555_v44 = vunpack.i.l.bf16 %v554_v30 }
  0x8f   : > { %v305_v41 = vsel %vm303_vm5, %v550_v35, %v551_v34  ;;  %v346_v48 = vsel %vm342_vm6, %v242_v37, %v311_v38  ;;  %v345_v53 = vsel %vm342_vm6, %v241_v51, %v310_v40 }
  0x90   : > { %v257_v45 = vpop.permute.xlu1 %256  ;;  %v298_v46 = vpop.permute.xlu0 %297  ;;  %v344_v47 = vsel %vm342_vm6, %v223_v36, %v305_v41  ;;  %v264_v55 = vsel %vm262_vm8, %v555_v44, %v556_v43 }
  0x91   : > { %v304_v49 = vsel %vm303_vm5, %v298_v46, %v550_v35  ;;  %v510_v50 = vpack.c.bf16 %v346_v48, %v344_v47  ;;  %v263_v58 = vsel %vm262_vm8, %v257_v45, %v555_v44  ;;  %v268_v61 = vsel %vm211_vm3, %v264_v55, 0.0 }
  0x92   : > { %v343_v52 = vsel %vm342_vm6, %v222_v42, %v304_v49  ;;  %v267_v62 = vsel %vm210_vm7, %v263_v58, 0.0  ;;  %v328_v6 = vrot.slane %v268_v61, 4 }
  0x93   : > { %511 = vmatprep.subr.bf16.mxu0 %v510_v50  ;;  %v512_v54 = vpack.c.bf16 %v345_v53, %v343_v52  ;;  %v327_v11 = vrot.slane %v267_v62, 4 }
  0x94   : > { %v270_v56 = vpop.permute.xlu1 %269  ;;  %v559_v57 = vpop.permute.xlu0 %558 }
  0x95   : > { %v561_v59 = vunpack.i.h.bf16 %v559_v57  ;;  %v560_v60 = vunpack.i.l.bf16 %v559_v57  ;;  %513 = vmatpush1.bf16.msra.mxu0 %v512_v54 }
  0x97   : > { %v277_v63 = vsel %vm275_vm9, %v560_v60, %v561_v59  ;;  %v276_v7 = vsel %vm275_vm9, %v270_v56, %v560_v60 }
  0x98   : > { %v569_v0 = vpop.permute.xlu1 %568  ;;  %v564_v1 = vpop.permute.xlu0 %563  ;;  %v281_v10 = vsel %vm201_vm1, %v277_v63, 0.0  ;;  %v280_v16 = vsel %vm200_vm2, %v276_v7, 0.0 }
  0x99   : > { %v571_v2 = vunpack.i.h.bf16 %v569_v0  ;;  %v570_v3 = vunpack.i.l.bf16 %v569_v0  ;;  %v566_v4 = vunpack.i.h.bf16 %v564_v1  ;;  %v565_v5 = vunpack.i.l.bf16 %v564_v1 }
  0x9b   : > { %v339_v8 = vsel %vm337_vm10, %v570_v3, %v571_v2  ;;  %v322_v9 = vsel %vm320_vm11, %v565_v5, %v566_v4 }
  0x9c   : > { %v332_v12 = vpop.permute.xlu1 %331  ;;  %v315_v13 = vpop.permute.xlu0 %314  ;;  %v348_v14 = vsel %vm342_vm6, %v322_v9, %v328_v6  ;;  %v350_v15 = vsel %vm342_vm6, %v281_v10, %v339_v8 }
  0x9d   : > { %v338_v20 = vsel %vm337_vm10, %v332_v12, %v570_v3  ;;  %v321_v21 = vsel %vm320_vm11, %v315_v13, %v565_v5  ;;  %v514_v22 = vpack.c.bf16 %v350_v15, %v348_v14 }
  0x9e   : > { %v349_v23 = vsel %vm342_vm6, %v280_v16, %v338_v20  ;;  %v347_v17 = vsel %vm342_vm6, %v321_v21, %v327_v11 }
  0x9f   : > { %515 = vmatprep.subr.bf16.mxu0 %v514_v22  ;;  %v516_v24 = vpack.c.bf16 %v349_v23, %v347_v17 }
  0xa0   : > { %v287_v25 = vpop.permute.xlu1 %286  ;;  %v285_v27 = vpop.permute.xlu0 %284 }
  0xa1   : > { %v290_v28 = vsel %vm288_vm12, %v285_v27, %v287_v25  ;;  %517 = vmatpush1.bf16.msra.mxu0 %v516_v24 }
  0xa2   : > { %v294_v18 = vsel %vm211_vm3, %v290_v28, 0.0 }
  0xa3   : > { %504 = vmatprep.subr.msk.mxu0 %vm342_vm6, %v294_v18 }
  0xa4   : > { %v283_v29 = vpop.permute.xlu0 %282 }
  0xa5   : > { %v289_v30 = vsel %vm288_vm12, %v283_v29, %v285_v27 }
  0xa6   : > { %v293_v32 = vsel %vm210_vm7, %v289_v30, 0.0 }
  0xa7   : > { %505 = vmatpush1.msk.msra.mxu0 %vm342_vm6, %v293_v32 }
  0xa8   : > { %506 = vmatmul.mubr.msk.f32.vlgmr.msra.gmra.mrb[0].mxu0 %vm358_vm13, %v351_v31 }
  0xb1   : > { %v356_v33 = vpop.permute.xlu1 %355 }
 0x17b   : > { %v434_v19 = vpop.f32.mrb[0].mxu0 }
 0x17c   : > { %v435_v34 = vadd.f32 %v434_v19, %v356_v33  ;;  %v436_v35 = vpop.f32.mrb[1].mxu0 }
 0x17d   : > { %v437_v36 = vadd.f32 %v436_v35, %v356_v33 }
 0x17e   : > { %439 = vst [vmem:[%s170_s6] sm:$0xff] %v435_v34 }
 0x17f   : > { %440 = vst [vmem:[%s170_s6 + $0x8] sm:$0xff] %v437_v36 }
 0x180 PF: > { %s13_s12 = sadd.s32 1, %s583_s12  }
 0x181   : > { %p10_p4 = scmp.ge.s32.totalorder %s13_s12, 4  }
 0x183   :  { %12 = sbr.rel (!%p10_p4) target bundleno = 1 (0x1), region = 62 }

</bundles_post_ra>
